<compile_context>
chip_gen: v5e
topology: v5e:2x2
jax: 0.10.0
libtpu: 0.0.40
codegen_flags: <defaults>
</compile_context>

<pallas_src>
import numpy as np
import jax
import jax.numpy as jnp
from jax import lax
from jax.experimental import pallas as pl
from jax.experimental.pallas import tpu as pltpu

_LANE = 128
_MAX_TILE_F = 65536  # 64K lanes: 2 x C x 64K x 4B ~ few MiB double-buffered


def _round_up(x, m):
    return ((x + m - 1) // m) * m


def _default_num_splits():
    """Grid length target: 2 on v7x (2 TensorCores/chip), 1 on v5e/v6e."""
    try:
        kind = jax.devices()[0].device_kind.lower()
        if "7" in kind:
            return 2
    except Exception:
        pass
    return 1


def _precompute_knots(xk, yk):
    """Hoisted per-knot carry chain (tiny O(nk*C) JAX ops in the wrapper).

    Returns:
      x1_prev : (nk,)   carried left knot x before processing knot i
      y1_prev : (C, nk) carried left knot y before processing knot i
      inv_dt0 : (nk,)   1/(x2-x1) gated to 0 when the knot is degenerate
    """
    ykT = yk.T  # (nk, C)

    def step(carry, inp):
        x1, y1 = carry
        x2, y2 = inp
        valid = x2 > x1
        safe_dt = jnp.where(valid, x2 - x1, jnp.float32(1.0))
        inv = jnp.where(valid, 1.0 / safe_dt, 0.0)
        new_carry = (jnp.where(valid, x2, x1), jnp.where(valid, y2, y1))
        return new_carry, (x1, y1, inv)

    (_, _), (x1_prev, y1_prev, inv_dt0) = lax.scan(
        step, (jnp.float32(0.0), ykT[0]), (xk, ykT))
    return x1_prev, y1_prev.T, inv_dt0


def _make_kernel(nk, num_frames, has_xs):
    """Kernel body.

    Refs:
      scal_ref  : (3, nk)            f32 SMEM  rows = [xk, x1_prev, inv_dt0]
      y1p_ref   : (C, nk)            f32 VMEM  (resident)
      dy_ref    : (C, nk)            f32 VMEM  (resident; dy = yk - y1_prev)
      frame_ref : (1, TILE_F)        f32 VMEM  frame indices of this tile
      xs_ref    : (1, TILE_F)        f32 VMEM  (only when has_xs)
      o_ref     : (C, TILE_F)        f32 VMEM
    """

    def compute(scal_ref, y1p_ref, dy_ref, frame_ref, o_ref, xs_row):
        frame_idx = frame_ref[...]                                 # (1, F)
        xs = frame_idx if xs_row is None else xs_row               # (1, F)

        ys = jnp.zeros(o_ref.shape, jnp.float32)

        # Independent, unrolled knot bodies (nk is a small static constant).
        # Segments [x1, x2) are disjoint, so select-overwrite == masked sum.
        for i in range(nk):
            x2 = scal_ref[0, i]                                    # scalar
            x1 = scal_ref[1, i]                                    # scalar
            inv = scal_ref[2, i]                                   # scalar
            seg = jnp.logical_and(x1 <= xs, xs < x2)               # (1, F)
            t = (xs - x1) * inv                                    # (1, F)
            val = y1p_ref[:, i:i + 1] + t * dy_ref[:, i:i + 1]     # (C, F)
            ys = jnp.where(seg, val, ys)

        # Tail fill (indexed by frame index, matching the PyTorch reference):
        # ys[floor(xk[-1]):, :] = yk[:, -1]  iff xk[-1] < num_frames.
        x_last = scal_ref[0, nk - 1]
        y_last = y1p_ref[:, nk - 1:nk] + dy_ref[:, nk - 1:nk]      # == yk[:, -1]
        tail = jnp.logical_and(x_last < jnp.float32(num_frames),
                               frame_idx >= jnp.floor(x_last))     # (1, F)
        o_ref[...] = jnp.where(tail, y_last, ys)

    if has_xs:
        def kernel(scal_ref, y1p_ref, dy_ref, frame_ref, xs_ref, o_ref):
            compute(scal_ref, y1p_ref, dy_ref, frame_ref, o_ref, xs_ref[...])
    else:
        def kernel(scal_ref, y1p_ref, dy_ref, frame_ref, o_ref):
            compute(scal_ref, y1p_ref, dy_ref, frame_ref, o_ref, None)
    return kernel


def linear_fit_forward(params, num_frames, num_curves, xs=None,
                       num_splits=None, max_tile_frames=_MAX_TILE_F,
                       transpose_output=True):
    """JAX/Pallas equivalent of LinearFit.forward(params, xs).

    Returns ys of shape (num_frames, num_curves) float32 (module semantics);
    pass transpose_output=False to skip the wrapper-side HBM transpose and get
    the kernel-native (num_curves, num_frames) layout.
    """
    params = jnp.asarray(params, jnp.float32).reshape(1 + num_curves, -1)
    nk = params.shape[1]
    xk = params[0, :]                     # (nk,)
    yk = params[1:, :]                    # (C, nk)

    # Hoisted per-knot scalar carries (no serialized chain inside the kernel).
    x1_prev, y1_prev, inv_dt0 = _precompute_knots(xk, yk)
    dy = yk - y1_prev                                              # (C, nk)
    scal = jnp.stack([xk, x1_prev, inv_dt0], axis=0)               # (3, nk)

    # Frame tiling along the lane axis: target exactly `num_splits` grid steps
    # (2 on v7x for its two TCs, 1 elsewhere) -- the kernel is step-overhead
    # bound, so fewer/bigger tiles is the main lever.  Cap at 64K lanes.
    if num_splits is None:
        num_splits = _default_num_splits()
    tile_f = _round_up(-(-num_frames // max(num_splits, 1)), _LANE)
    tile_f = max(_LANE, min(tile_f, max_tile_frames))
    f_pad = _round_up(num_frames, tile_f)
    grid = (f_pad // tile_f,)

    # Frame-index row (exact in f32 for num_frames < 2^24); also serves as xs
    # when the caller passes xs=None (xs defaults to arange(num_frames)).
    frames_row = jnp.arange(f_pad, dtype=jnp.float32).reshape(1, f_pad)

    in_specs = [
        pl.BlockSpec(memory_space=pltpu.MemorySpace.SMEM),          # scal (3,nk)
        pl.BlockSpec((num_curves, nk), lambda i: (0, 0)),           # y1_prev
        pl.BlockSpec((num_curves, nk), lambda i: (0, 0)),           # dy
        pl.BlockSpec((1, tile_f), lambda i: (0, i)),                # frame idx
    ]
    args = [scal, y1_prev, dy, frames_row]

    has_xs = xs is not None
    if has_xs:
        xs_row = jnp.asarray(xs, jnp.float32).reshape(1, num_frames)
        xs_row = jnp.pad(xs_row, ((0, 0), (0, f_pad - num_frames)),
                         constant_values=-1.0)                      # inert pad
        in_specs.append(pl.BlockSpec((1, tile_f), lambda i: (0, i)))
        args.append(xs_row)

    out = pl.pallas_call(
        _make_kernel(nk, num_frames, has_xs),
        out_shape=jax.ShapeDtypeStruct((num_curves, f_pad), jnp.float32),
        grid=grid,
        in_specs=in_specs,
        out_specs=pl.BlockSpec((num_curves, tile_f), lambda i: (0, i)),
        compiler_params=pltpu.CompilerParams(
            dimension_semantics=("parallel",)),
    )(*args)

    out = out[:, :num_frames]
    if transpose_output:
        out = out.T          # module semantics: (num_frames, num_curves)
    return out


def init_params(target_np, num_base):
    """Deterministic parameter init mirroring LinearFit.initParams (xk=None, eps=0)."""
    num_frames, num_curves = target_np.shape
    xk = np.linspace(0, num_frames - 1, num_base, dtype=np.float32)
    ik = np.linspace(0, num_frames - 1, num_base).astype(np.int64)
    yk = target_np[ik, :].T.astype(np.float32)          # (num_curves, nk)
    params = np.zeros((1 + num_curves, num_base), np.float32)
    params[0, :] = xk
    params[1:, :] = yk
    return params.flatten()


def ref_forward(params, num_frames, num_curves):
    """Numpy reference reproducing the PyTorch forward loop exactly."""
    p = np.asarray(params, dtype=np.float32).reshape(1 + num_curves, -1)
    xk = p[0]
    yk = p[1:].T                                        # (nk, num_curves)
    xs = np.arange(num_frames, dtype=np.float32)
    ys = np.zeros((num_frames, num_curves), np.float32)
    x1 = 0.0
    y1 = yk[0]
    for i2, x2 in enumerate(xk):
        y2 = yk[i2]
        if x2 > x1:
            mask = ((x1 <= xs) & (xs < x2)).astype(np.float32)[:, None]
            dt2 = (xs - x1)[:, None]
            dt1 = (x2 - xs)[:, None]
            dt0 = x2 - x1
            ys += mask * ((dt1 * y1[None, :] + dt2 * y2[None, :]) / dt0)
            x1 = x2
            y1 = y2
    x2 = xk[-1]
    if x2 < num_frames:
        t2 = int(np.floor(x2))
        ys[t2:num_frames, :] = yk[-1][None, :]
    return ys


if __name__ == "__main__":
    key = jax.random.PRNGKey(0)
    k1, k2 = jax.random.split(key)

    # -- test 1: module-default small shapes (also exercises the explicit-xs path)
    num_frames, num_curves, num_base = 16, 4, 5
    target = jax.random.normal(k1, (num_frames, num_curves), dtype=jnp.float32)
    params_np = init_params(np.asarray(target), num_base)
    params = jnp.asarray(params_np)

    out = jax.block_until_ready(linear_fit_forward(params, num_frames, num_curves))
    ref = ref_forward(params_np, num_frames, num_curves)
    assert out.shape == (num_frames, num_curves) and out.dtype == jnp.float32
    assert np.allclose(np.asarray(out), ref, atol=1e-5, rtol=1e-5), \
        float(np.abs(np.asarray(out) - ref).max())

    xs_explicit = jnp.arange(num_frames, dtype=jnp.float32)
    out_xs = jax.block_until_ready(
        linear_fit_forward(params, num_frames, num_curves, xs=xs_explicit))
    assert np.allclose(np.asarray(out_xs), ref, atol=1e-5, rtol=1e-5), \
        float(np.abs(np.asarray(out_xs) - ref).max())

    # -- test 2: more frames/curves, default (auto) tiling -> 1 tile (or 2 on v7x)
    F2, C2, nb2 = 700, 6, 9
    target2 = jax.random.normal(k2, (F2, C2), dtype=jnp.float32)
    params2_np = init_params(np.asarray(target2), nb2)
    ref2 = ref_forward(params2_np, F2, C2)

    out2 = jax.block_until_ready(
        linear_fit_forward(jnp.asarray(params2_np), F2, C2))
    assert out2.shape == (F2, C2)
    assert np.allclose(np.asarray(out2), ref2, atol=1e-5, rtol=1e-5), \
        float(np.abs(np.asarray(out2) - ref2).max())

    # -- test 3: force a 2-step grid to validate the multi-tile (v7x-style) path
    out3 = jax.block_until_ready(
        linear_fit_forward(jnp.asarray(params2_np), F2, C2, num_splits=2))
    assert np.allclose(np.asarray(out3), ref2, atol=1e-5, rtol=1e-5), \
        float(np.abs(np.asarray(out3) - ref2).max())

    print("KERNEL_OK")
</pallas_src>

<mosaic_0001>
module attributes {stable_mosaic.version = 11 : i64} {
  func.func @kernel(%arg0: i32, %arg1: memref<3x5xf32, #tpu.memory_space<smem>>, %arg2: memref<4x5xf32, #tpu.memory_space<vmem>>, %arg3: memref<4x5xf32, #tpu.memory_space<vmem>>, %arg4: memref<1x128xf32, #tpu.memory_space<vmem>>, %arg5: memref<4x128xf32, #tpu.memory_space<vmem>>) attributes {dimension_semantics = [#tpu.dimension_semantics<parallel>], iteration_bounds = array<i64: 1>, scalar_prefetch = 0 : i64, scratch_operands = 0 : i64, tpu.core_type = #tpu.core_type<tc>, window_params = [{transform_indices = @transform_0, window_bounds = array<i64: 3, 5>}, {pipeline_mode = #tpu.pipeline_mode<synchronous>, transform_indices = @transform_1, window_bounds = array<i64: 4, 5>}, {pipeline_mode = #tpu.pipeline_mode<synchronous>, transform_indices = @transform_2, window_bounds = array<i64: 4, 5>}, {transform_indices = @transform_3, window_bounds = array<i64: 1, 128>}, {transform_indices = @transform_4, window_bounds = array<i64: 4, 128>}]} {
    %c0 = arith.constant 0 : index
    %c0_0 = arith.constant 0 : index
    %0 = vector.load %arg4[%c0, %c0_0] : memref<1x128xf32, #tpu.memory_space<vmem>>, vector<1x128xf32>
    %cst = arith.constant 0.000000e+00 : f32
    %1 = vector.broadcast %cst : f32 to vector<4x128xf32>
    %c0_1 = arith.constant 0 : index
    %c0_2 = arith.constant 0 : index
    %2 = memref.load %arg1[%c0_1, %c0_2] : memref<3x5xf32, #tpu.memory_space<smem>>
    %c1 = arith.constant 1 : index
    %c0_3 = arith.constant 0 : index
    %3 = memref.load %arg1[%c1, %c0_3] : memref<3x5xf32, #tpu.memory_space<smem>>
    %c2 = arith.constant 2 : index
    %c0_4 = arith.constant 0 : index
    %4 = memref.load %arg1[%c2, %c0_4] : memref<3x5xf32, #tpu.memory_space<smem>>
    %5 = vector.broadcast %3 : f32 to vector<1x128xf32>
    %6 = arith.cmpf ole, %5, %0 : vector<1x128xf32>
    %7 = vector.broadcast %2 : f32 to vector<1x128xf32>
    %8 = arith.cmpf olt, %0, %7 : vector<1x128xf32>
    %9 = arith.andi %6, %8 : vector<1x128xi1>
    %10 = vector.broadcast %3 : f32 to vector<1x128xf32>
    %11 = arith.subf %0, %10 : vector<1x128xf32>
    %12 = vector.broadcast %4 : f32 to vector<1x128xf32>
    %13 = arith.mulf %11, %12 : vector<1x128xf32>
    %c0_5 = arith.constant 0 : index
    %c0_6 = arith.constant 0 : index
    %14 = vector.load %arg2[%c0_5, %c0_6] : memref<4x5xf32, #tpu.memory_space<vmem>>, vector<4x1xf32>
    %c0_7 = arith.constant 0 : index
    %c0_8 = arith.constant 0 : index
    %15 = vector.load %arg3[%c0_7, %c0_8] : memref<4x5xf32, #tpu.memory_space<vmem>>, vector<4x1xf32>
    %16 = vector.broadcast %13 : vector<1x128xf32> to vector<4x128xf32>
    %17 = vector.broadcast %15 : vector<4x1xf32> to vector<4x128xf32>
    %18 = arith.mulf %16, %17 : vector<4x128xf32>
    %19 = vector.broadcast %14 : vector<4x1xf32> to vector<4x128xf32>
    %20 = arith.addf %19, %18 : vector<4x128xf32>
    %21 = vector.shape_cast %9 : vector<1x128xi1> to vector<1x128xi1>
    %22 = vector.broadcast %21 : vector<1x128xi1> to vector<4x128xi1>
    %23 = arith.select %22, %20, %1 : vector<4x128xi1>, vector<4x128xf32>
    %c0_9 = arith.constant 0 : index
    %c1_10 = arith.constant 1 : index
    %24 = memref.load %arg1[%c0_9, %c1_10] : memref<3x5xf32, #tpu.memory_space<smem>>
    %c1_11 = arith.constant 1 : index
    %c1_12 = arith.constant 1 : index
    %25 = memref.load %arg1[%c1_11, %c1_12] : memref<3x5xf32, #tpu.memory_space<smem>>
    %c2_13 = arith.constant 2 : index
    %c1_14 = arith.constant 1 : index
    %26 = memref.load %arg1[%c2_13, %c1_14] : memref<3x5xf32, #tpu.memory_space<smem>>
    %27 = vector.broadcast %25 : f32 to vector<1x128xf32>
    %28 = arith.cmpf ole, %27, %0 : vector<1x128xf32>
    %29 = vector.broadcast %24 : f32 to vector<1x128xf32>
    %30 = arith.cmpf olt, %0, %29 : vector<1x128xf32>
    %31 = arith.andi %28, %30 : vector<1x128xi1>
    %32 = vector.broadcast %25 : f32 to vector<1x128xf32>
    %33 = arith.subf %0, %32 : vector<1x128xf32>
    %34 = vector.broadcast %26 : f32 to vector<1x128xf32>
    %35 = arith.mulf %33, %34 : vector<1x128xf32>
    %c0_15 = arith.constant 0 : index
    %c1_16 = arith.constant 1 : index
    %36 = vector.load %arg2[%c0_15, %c1_16] : memref<4x5xf32, #tpu.memory_space<vmem>>, vector<4x1xf32>
    %c0_17 = arith.constant 0 : index
    %c1_18 = arith.constant 1 : index
    %37 = vector.load %arg3[%c0_17, %c1_18] : memref<4x5xf32, #tpu.memory_space<vmem>>, vector<4x1xf32>
    %38 = vector.broadcast %35 : vector<1x128xf32> to vector<4x128xf32>
    %39 = vector.broadcast %37 : vector<4x1xf32> to vector<4x128xf32>
    %40 = arith.mulf %38, %39 : vector<4x128xf32>
    %41 = vector.broadcast %36 : vector<4x1xf32> to vector<4x128xf32>
    %42 = arith.addf %41, %40 : vector<4x128xf32>
    %43 = vector.shape_cast %31 : vector<1x128xi1> to vector<1x128xi1>
    %44 = vector.broadcast %43 : vector<1x128xi1> to vector<4x128xi1>
    %45 = arith.select %44, %42, %23 : vector<4x128xi1>, vector<4x128xf32>
    %c0_19 = arith.constant 0 : index
    %c2_20 = arith.constant 2 : index
    %46 = memref.load %arg1[%c0_19, %c2_20] : memref<3x5xf32, #tpu.memory_space<smem>>
    %c1_21 = arith.constant 1 : index
    %c2_22 = arith.constant 2 : index
    %47 = memref.load %arg1[%c1_21, %c2_22] : memref<3x5xf32, #tpu.memory_space<smem>>
    %c2_23 = arith.constant 2 : index
    %c2_24 = arith.constant 2 : index
    %48 = memref.load %arg1[%c2_23, %c2_24] : memref<3x5xf32, #tpu.memory_space<smem>>
    %49 = vector.broadcast %47 : f32 to vector<1x128xf32>
    %50 = arith.cmpf ole, %49, %0 : vector<1x128xf32>
    %51 = vector.broadcast %46 : f32 to vector<1x128xf32>
    %52 = arith.cmpf olt, %0, %51 : vector<1x128xf32>
    %53 = arith.andi %50, %52 : vector<1x128xi1>
    %54 = vector.broadcast %47 : f32 to vector<1x128xf32>
    %55 = arith.subf %0, %54 : vector<1x128xf32>
    %56 = vector.broadcast %48 : f32 to vector<1x128xf32>
    %57 = arith.mulf %55, %56 : vector<1x128xf32>
    %c0_25 = arith.constant 0 : index
    %c2_26 = arith.constant 2 : index
    %58 = vector.load %arg2[%c0_25, %c2_26] : memref<4x5xf32, #tpu.memory_space<vmem>>, vector<4x1xf32>
    %c0_27 = arith.constant 0 : index
    %c2_28 = arith.constant 2 : index
    %59 = vector.load %arg3[%c0_27, %c2_28] : memref<4x5xf32, #tpu.memory_space<vmem>>, vector<4x1xf32>
    %60 = vector.broadcast %57 : vector<1x128xf32> to vector<4x128xf32>
    %61 = vector.broadcast %59 : vector<4x1xf32> to vector<4x128xf32>
    %62 = arith.mulf %60, %61 : vector<4x128xf32>
    %63 = vector.broadcast %58 : vector<4x1xf32> to vector<4x128xf32>
    %64 = arith.addf %63, %62 : vector<4x128xf32>
    %65 = vector.shape_cast %53 : vector<1x128xi1> to vector<1x128xi1>
    %66 = vector.broadcast %65 : vector<1x128xi1> to vector<4x128xi1>
    %67 = arith.select %66, %64, %45 : vector<4x128xi1>, vector<4x128xf32>
    %c0_29 = arith.constant 0 : index
    %c3 = arith.constant 3 : index
    %68 = memref.load %arg1[%c0_29, %c3] : memref<3x5xf32, #tpu.memory_space<smem>>
    %c1_30 = arith.constant 1 : index
    %c3_31 = arith.constant 3 : index
    %69 = memref.load %arg1[%c1_30, %c3_31] : memref<3x5xf32, #tpu.memory_space<smem>>
    %c2_32 = arith.constant 2 : index
    %c3_33 = arith.constant 3 : index
    %70 = memref.load %arg1[%c2_32, %c3_33] : memref<3x5xf32, #tpu.memory_space<smem>>
    %71 = vector.broadcast %69 : f32 to vector<1x128xf32>
    %72 = arith.cmpf ole, %71, %0 : vector<1x128xf32>
    %73 = vector.broadcast %68 : f32 to vector<1x128xf32>
    %74 = arith.cmpf olt, %0, %73 : vector<1x128xf32>
    %75 = arith.andi %72, %74 : vector<1x128xi1>
    %76 = vector.broadcast %69 : f32 to vector<1x128xf32>
    %77 = arith.subf %0, %76 : vector<1x128xf32>
    %78 = vector.broadcast %70 : f32 to vector<1x128xf32>
    %79 = arith.mulf %77, %78 : vector<1x128xf32>
    %c0_34 = arith.constant 0 : index
    %c3_35 = arith.constant 3 : index
    %80 = vector.load %arg2[%c0_34, %c3_35] : memref<4x5xf32, #tpu.memory_space<vmem>>, vector<4x1xf32>
    %c0_36 = arith.constant 0 : index
    %c3_37 = arith.constant 3 : index
    %81 = vector.load %arg3[%c0_36, %c3_37] : memref<4x5xf32, #tpu.memory_space<vmem>>, vector<4x1xf32>
    %82 = vector.broadcast %79 : vector<1x128xf32> to vector<4x128xf32>
    %83 = vector.broadcast %81 : vector<4x1xf32> to vector<4x128xf32>
    %84 = arith.mulf %82, %83 : vector<4x128xf32>
    %85 = vector.broadcast %80 : vector<4x1xf32> to vector<4x128xf32>
    %86 = arith.addf %85, %84 : vector<4x128xf32>
    %87 = vector.shape_cast %75 : vector<1x128xi1> to vector<1x128xi1>
    %88 = vector.broadcast %87 : vector<1x128xi1> to vector<4x128xi1>
    %89 = arith.select %88, %86, %67 : vector<4x128xi1>, vector<4x128xf32>
    %c0_38 = arith.constant 0 : index
    %c4 = arith.constant 4 : index
    %90 = memref.load %arg1[%c0_38, %c4] : memref<3x5xf32, #tpu.memory_space<smem>>
    %c1_39 = arith.constant 1 : index
    %c4_40 = arith.constant 4 : index
    %91 = memref.load %arg1[%c1_39, %c4_40] : memref<3x5xf32, #tpu.memory_space<smem>>
    %c2_41 = arith.constant 2 : index
    %c4_42 = arith.constant 4 : index
    %92 = memref.load %arg1[%c2_41, %c4_42] : memref<3x5xf32, #tpu.memory_space<smem>>
    %93 = vector.broadcast %91 : f32 to vector<1x128xf32>
    %94 = arith.cmpf ole, %93, %0 : vector<1x128xf32>
    %95 = vector.broadcast %90 : f32 to vector<1x128xf32>
    %96 = arith.cmpf olt, %0, %95 : vector<1x128xf32>
    %97 = arith.andi %94, %96 : vector<1x128xi1>
    %98 = vector.broadcast %91 : f32 to vector<1x128xf32>
    %99 = arith.subf %0, %98 : vector<1x128xf32>
    %100 = vector.broadcast %92 : f32 to vector<1x128xf32>
    %101 = arith.mulf %99, %100 : vector<1x128xf32>
    %c0_43 = arith.constant 0 : index
    %c4_44 = arith.constant 4 : index
    %102 = vector.load %arg2[%c0_43, %c4_44] : memref<4x5xf32, #tpu.memory_space<vmem>>, vector<4x1xf32>
    %c0_45 = arith.constant 0 : index
    %c4_46 = arith.constant 4 : index
    %103 = vector.load %arg3[%c0_45, %c4_46] : memref<4x5xf32, #tpu.memory_space<vmem>>, vector<4x1xf32>
    %104 = vector.broadcast %101 : vector<1x128xf32> to vector<4x128xf32>
    %105 = vector.broadcast %103 : vector<4x1xf32> to vector<4x128xf32>
    %106 = arith.mulf %104, %105 : vector<4x128xf32>
    %107 = vector.broadcast %102 : vector<4x1xf32> to vector<4x128xf32>
    %108 = arith.addf %107, %106 : vector<4x128xf32>
    %109 = vector.shape_cast %97 : vector<1x128xi1> to vector<1x128xi1>
    %110 = vector.broadcast %109 : vector<1x128xi1> to vector<4x128xi1>
    %111 = arith.select %110, %108, %89 : vector<4x128xi1>, vector<4x128xf32>
    %c0_47 = arith.constant 0 : index
    %c4_48 = arith.constant 4 : index
    %112 = memref.load %arg1[%c0_47, %c4_48] : memref<3x5xf32, #tpu.memory_space<smem>>
    %c0_49 = arith.constant 0 : index
    %c4_50 = arith.constant 4 : index
    %113 = vector.load %arg2[%c0_49, %c4_50] : memref<4x5xf32, #tpu.memory_space<vmem>>, vector<4x1xf32>
    %c0_51 = arith.constant 0 : index
    %c4_52 = arith.constant 4 : index
    %114 = vector.load %arg3[%c0_51, %c4_52] : memref<4x5xf32, #tpu.memory_space<vmem>>, vector<4x1xf32>
    %115 = arith.addf %113, %114 : vector<4x1xf32>
    %cst_53 = arith.constant 1.600000e+01 : f32
    %116 = arith.cmpf olt, %112, %cst_53 : f32
    %117 = math.floor %112 : f32
    %118 = vector.broadcast %117 : f32 to vector<1x128xf32>
    %119 = arith.cmpf oge, %0, %118 : vector<1x128xf32>
    %120 = vector.broadcast %116 : i1 to vector<1x128xi1>
    %121 = arith.andi %120, %119 : vector<1x128xi1>
    %122 = vector.shape_cast %121 : vector<1x128xi1> to vector<1x128xi1>
    %123 = vector.broadcast %122 : vector<1x128xi1> to vector<4x128xi1>
    %124 = vector.shape_cast %115 : vector<4x1xf32> to vector<4x1xf32>
    %125 = vector.broadcast %124 : vector<4x1xf32> to vector<4x128xf32>
    %126 = arith.select %123, %125, %111 : vector<4x128xi1>, vector<4x128xf32>
    %c0_54 = arith.constant 0 : index
    %c0_55 = arith.constant 0 : index
    %127 = vector.load %arg5[%c0_54, %c0_55] : memref<4x128xf32, #tpu.memory_space<vmem>>, vector<4x128xf32>
    tpu.vector_store %arg5[%c0_54, %c0_55], %126 {strides = array<i32>} : memref<4x128xf32, #tpu.memory_space<vmem>>, vector<4x128xf32>,
    return
  }
  func.func @transform_0(%arg0: i32) -> (i32, i32) {
    %c0_i32 = arith.constant 0 : i32
    %c0_i32_0 = arith.constant 0 : i32
    %c0_i32_1 = arith.constant 0 : i32
    return %c0_i32, %c0_i32_0 : i32, i32
  }
  func.func @transform_1(%arg0: i32) -> (i32, i32) {
    %c0_i32 = arith.constant 0 : i32
    %c0_i32_0 = arith.constant 0 : i32
    %c0_i32_1 = arith.constant 0 : i32
    return %c0_i32, %c0_i32_0 : i32, i32
  }
  func.func @transform_2(%arg0: i32) -> (i32, i32) {
    %c0_i32 = arith.constant 0 : i32
    %c0_i32_0 = arith.constant 0 : i32
    %c0_i32_1 = arith.constant 0 : i32
    return %c0_i32, %c0_i32_0 : i32, i32
  }
  func.func @transform_3(%arg0: i32) -> (i32, i32) {
    %c0_i32 = arith.constant 0 : i32
    %c0_i32_0 = arith.constant 0 : i32
    return %c0_i32, %arg0 : i32, i32
  }
  func.func @transform_4(%arg0: i32) -> (i32, i32) {
    %c0_i32 = arith.constant 0 : i32
    %c0_i32_0 = arith.constant 0 : i32
    return %c0_i32, %arg0 : i32, i32
  }
}

</mosaic_0001>

<bundles_post_ra>
// kernel: tpu_custom_call.1
= control target key start
LH: loop header
LB: loop body
LE: loop exit
PB: predicated region body
PF: predicated region fallthrough
CT: control target
= control target key end

     0   :  { %9 = vsyncpa [#allocation5], 0  ;;  %s563_s0 = inlined_call_operand.hbm [shape: f32[3,5], index: 0, kind: input, shape index: {}]   ;;  %s564_s1 = inlined_call_operand.hbm [shape: f32[4,5], index: 1, kind: input, shape index: {}]   ;;  %s565_s2 = inlined_call_operand.hbm [shape: f32[4,5], index: 2, kind: input, shape index: {}]   ;;  %s566_s3 = inlined_call_operand.vmem [shape: f32[1,128], index: 3, kind: input, shape index: {}]   ;;  %s567_s4 = inlined_call_operand.hbm [shape: f32[4,128], index: 4, kind: output, shape index: {}]  }
   0x1   :  { %10 = vsyncpa [#allocation3], 0 }
   0x2   :  { %11 = vsyncpa [#allocation8], 0 }
   0x3   :  { %12 = vsyncpa [#allocation4], 0  ;;  %s18_s17 = sshll.u32 %s563_s0, 4  ;;  %s27_s20 = sshll.u32 %s564_s1, 4  ;;  %s19_s17 = int_to_ptr.hbm [resolvable:$true] %s18_s17  ;;  %s28_s20 = int_to_ptr.hbm [resolvable:$true] %s27_s20 }
   0x4   :  { %s366_s21 = smov [#allocation2]   ;;  %s367_s22 = smov [#allocation6]  }
   0x5   :  { %21 = dma.hbm_to_smem %s19_s17, 64, %s366_s21, [#allocation5]  }
   0x6   :  { %s29_s23 = sshll.u32 %s367_s22, 4  ;;  %s38_s26 = sshll.u32 %s565_s2, 4  ;;  %s30_s23 = int_to_ptr.vmem [resolvable:$true] %s29_s23  ;;  %s39_s26 = int_to_ptr.hbm [resolvable:$true] %s38_s26 }
   0x7   :  { %32 = dma.hbm_to_vmem [thread:$0]  %s28_s20, 64, %s30_s23, [#allocation3]  }
   0x8   :  { %s368_s27 = smov [#allocation7]  }
   0x9   :  { %s40_s28 = sshll.u32 %s368_s27, 4  ;;  %s41_s28 = int_to_ptr.vmem [resolvable:$true] %s40_s28 }
   0xa   :  { %43 = dma.hbm_to_vmem [thread:$0]  %s39_s26, 64, %s41_s28, [#allocation8]  }
   0xb   :  { %358 = dma.done.wait [#allocation5], 64  }
   0xc   :  { %359 = vsyncadd [#allocation5], 4294967232 }
   0xd   :  { %360 = dma.done.wait [#allocation3], 64  }
   0xe   :  { %361 = vsyncadd [#allocation3], 4294967232 }
   0xf   :  { %362 = dma.done.wait [#allocation8], 64  }
  0x10   :  { %363 = vsyncadd [#allocation8], 4294967232 }
  0x11   :  { %58 = sfence }
  0x12   :  { %v72_v0 = vld [vmem:[#allocation7] sm:$0xf]  ;;  %v369_v1 = vmov 1   ;;  %v370_v2 = vmov 0   ;;  %v71_v3 = vld [vmem:[#allocation6] sm:$0xf] }
  0x13   :  { %266 = vset.pattern.permute.xlu1 %v369_v1  ;;  %265 = vset.pattern.permute.xlu0 %v370_v2  ;;  %v371_v4 = vmov 2   ;;  %v372_v5 = vmov 3   ;;  %v373_v6 = vmov 4   ;;  %v204_v7 = vadd.f32 %v72_v0, %v71_v3  ;;  %s410_s0 = sld [smem:[#allocation2 + $0x1]]  ;;  %v431_v11 = vld [vmem:[%s566_s3] sm:$0x1] }
  0x14   :  { %107 = vperm.xlu1 %266, %v72_v0   ;;  %78 = vperm.xlu0 %265, %v72_v0   ;;  %s242_s1 = sld [smem:[#allocation2 + $0x80]]  ;;  %s374_s18 = smov [#allocation9]  }
  0x15   :  { %268 = vset.pattern.permute.xlu2 %v369_v1  ;;  %s245_s2 = sld [smem:[#allocation2 + $0x81]]  ;;  %s228_s19 = sshll.u32 %s374_s18, 4  ;;  %s229_s19 = int_to_ptr.vmem [resolvable:$true] %s228_s19 }
  0x16   :  { %112 = vperm.xlu2 %268, %v71_v3   ;;  %s412_s29 = sld [smem:[#allocation2 + $0x101]]  ;;  %s230_s22 = sshll.u32 %s567_s4, 4  ;;  %s231_s22 = int_to_ptr.hbm [resolvable:$true] %s230_s22 }
  0x17   :  { %s243_s30 = sld [smem:[#allocation2 + $0x100]] }
  0x18   :  { %s60_s5 = sld [smem:[#allocation2]] }
  0x19   :  { %s414_s6 = sld [smem:[#allocation2 + $0x4]]  ;;  %v97_v17 = vstv %s410_s0 }
  0x1a   :  { %s416_s7 = sld [smem:[#allocation2 + $0x82]]  ;;  %v63_v8 = vstv %s242_s1  ;;  %vm462_vm3 = vcmp.lt.f32.partialorder %v431_v11, %v97_v17 }
  0x1b   :  { %s418_s8 = sld [smem:[#allocation2 + $0x83]]  ;;  %v95_v13 = vstv %s245_s2  ;;  %v68_v14 = vsub.f32 %v431_v11, %v63_v8  ;;  %vm447_vm0 = vcmp.le.f32.partialorder %v63_v8, %v431_v11 }
  0x1c   :  { %267 = vset.pattern.permute.xlu1 %v371_v4  ;;  %84 = vperm.xlu0 %265, %v71_v3   ;;  %s420_s9 = sld [smem:[#allocation2 + $0x2]]  ;;  %v101_v18 = vstv %s412_s29  ;;  %v100_v19 = vsub.f32 %v431_v11, %v95_v13  ;;  %vm457_vm2 = vcmp.le.f32.partialorder %v95_v13, %v431_v11 }
  0x1d   :  { %135 = vperm.xlu1 %267, %v72_v0   ;;  %s424_s10 = sld [smem:[#allocation2 + $0x3]]  ;;  %v69_v15 = vstv %s243_s30  ;;  %vm99_vm5 = vmand %vm457_vm2, %vm462_vm3 }
  0x1e   :  { %269 = vset.pattern.permute.xlu2 %v372_v5  ;;  %s433_s13 = sld [smem:[#allocation2 + $0x102]]  ;;  %v65_v16 = vstv %s60_s5  ;;  %v70_v21 = vmul.f32 %v69_v15, %v68_v14  ;;  %v102_v30 = vmul.f32 %v101_v18, %v100_v19  ;;  %v116_v50 = vsel %vm99_vm5, 1, %v370_v2 }
  0x1f   :  { %163 = vperm.xlu2 %269, %v72_v0   ;;  %s436_s14 = sld [smem:[#allocation2 + $0x103]]  ;;  %p205_p0 = scmp.lt.f32.partialorder %s414_s6, 16.0  ;;  %vm452_vm1 = vcmp.lt.f32.partialorder %v431_v11, %v65_v16  ;;  %v181_v43 = vstv %s414_s6  ;;  %v117_v59 = vperm.slane %v116_v50, 0 }
  0x20   :  { %s438_s15 = sld [smem:[#allocation2 + $0x84]]  ;;  %v123_v20 = vstv %s416_s7  ;;  %vm67_vm4 = vmand %vm447_vm0, %vm452_vm1  ;;  %s206_s17 = sfloor.f32 %s414_s6  ;;  %v74_v34 = vperm.slane %v70_v21, 0  ;;  %v104_v48 = vperm.slane %v102_v30, 0  ;;  %vm528_vm12 = vcmp.lt.f32.partialorder %v431_v11, %v181_v43 }
  0x21   :  { %v151_v22 = vstv %s418_s8  ;;  %s467_s3 = sld [smem:[#allocation2 + $0x104]]  ;;  %v128_v29 = vsub.f32 %v431_v11, %v123_v20  ;;  %vm488_vm6 = vcmp.le.f32.partialorder %v123_v20, %v431_v11  ;;  %v88_v44 = vsel %vm67_vm4, 1, %v370_v2 }
  0x22   :  { %v125_v27 = vstv %s420_s9  ;;  %s473_s16 = scalar_select %p205_p0, 1, 0  ;;  %v156_v31 = vsub.f32 %v431_v11, %v151_v22  ;;  %vm498_vm8 = vcmp.le.f32.partialorder %v151_v22, %v431_v11  ;;  %v207_v46 = vstv %s206_s17 }
  0x23   :  { %v153_v28 = vstv %s424_s10  ;;  %vm493_vm7 = vcmp.lt.f32.partialorder %v431_v11, %v125_v27  ;;  %v89_v55 = vperm.slane %v88_v44, 0  ;;  %vm208_vm15 = vcmp.ge.f32.partialorder %v431_v11, %v207_v46 }
  0x24   :  { %270 = vset.pattern.permute.xlu0 %v371_v4  ;;  %v129_v33 = vstv %s433_s13  ;;  %vm503_vm9 = vcmp.lt.f32.partialorder %v431_v11, %v153_v28  ;;  %v210_v47 = vstv %s473_s16  ;;  %vm127_vm10 = vmand %vm488_vm6, %vm493_vm7  ;;  %vm118_vm3 = vcmp.eq.s32.totalorder %v117_v59, 1 }
  0x25   :  { %271 = vset.pattern.permute.xlu1 %v373_v6  ;;  %140 = vperm.xlu0 %270, %v71_v3   ;;  %v157_v35 = vstv %s436_s14  ;;  %v130_v45 = vmul.f32 %v129_v33, %v128_v29  ;;  %vm155_vm13 = vmand %vm498_vm8, %vm503_vm9  ;;  %vm211_vm14 = vcmp.eq.s32.totalorder %v210_v47, 1  ;;  %v144_v58 = vsel %vm127_vm10, 1, %v370_v2 }
  0x26   :  { %191 = vperm.xlu1 %271, %v72_v0   ;;  %v179_v42 = vstv %s438_s15  ;;  %v158_v49 = vmul.f32 %v157_v35, %v156_v31  ;;  %v172_v60 = vsel %vm155_vm13, 1, %v370_v2  ;;  %vm212_vm1 = vmand %vm211_vm14, %vm208_vm15  ;;  %vm545_vm2 = vcmp.eq.s32.totalorder %v89_v55, 1 }
  0x27   :  { %168 = vperm.xlu2 %269, %v71_v3   ;;  %vm522_vm11 = vcmp.le.f32.partialorder %v179_v42, %v431_v11  ;;  %v184_v53 = vsub.f32 %v431_v11, %v179_v42  ;;  %v185_v56 = vstv %s467_s3  ;;  %v132_v57 = vperm.slane %v130_v45, 0 }
  0x28   :  { %vm183_vm0 = vmand %vm522_vm11, %vm528_vm12  ;;  %v160_v0 = vperm.slane %v158_v49, 0  ;;  %v145_v4 = vperm.slane %v144_v58, 0  ;;  %v213_v11 = vsel %vm212_vm1, 1, %v370_v2  ;;  %v173_v14 = vperm.slane %v172_v60, 0 }
  0x29   :  { %v186_v62 = vmul.f32 %v185_v56, %v184_v53  ;;  %v200_v8 = vsel %vm183_vm0, 1, %v370_v2  ;;  %v214_v19 = vperm.slane %v213_v11, 0 }
  0x2a   :  { %vm554_vm4 = vcmp.eq.s32.totalorder %v145_v4, 1  ;;  %v201_v18 = vperm.slane %v200_v8, 0  ;;  %vm174_vm5 = vcmp.eq.s32.totalorder %v173_v14, 1 }
  0x2b   :  { %vm215_vm7 = vcmp.eq.s32.totalorder %v214_v19, 1 }
  0x2c   :  { %vm202_vm6 = vcmp.eq.s32.totalorder %v201_v18, 1 }
  0x2d   :  { %273 = vset.pattern.permute.xlu0 %v373_v6 }
  0x2e   :  { %196 = vperm.xlu1 %271, %v71_v3  }
  0x2f   :  { %272 = vset.pattern.permute.xlu2 %v373_v6 }
  0x30   :  { %218 = vperm.xlu2 %272, %v204_v7  }
  0x70   :  { %v422_v9 = vpop.permute.xlu2 %112 }
  0x79   :  { %v164_v36 = vpop.permute.xlu2 %163 }
  0x7a   :  { %v166_v16 = vmul.f32 %v164_v36, %v160_v0 }
  0x81   :  { %v169_v7 = vpop.permute.xlu2 %168 }
  0x82   :  { %v171_v22 = vadd.f32 %v169_v7, %v166_v16 }
  0x86   :  { %v426_v10 = vpop.permute.xlu1 %107  ;;  %v79_v12 = vpop.permute.xlu0 %78 }
  0x87   :  { %v81_v51 = vmul.f32 %v79_v12, %v74_v34  ;;  %v110_v63 = vmul.f32 %v426_v10, %v104_v48  ;;  %v188_v10 = vperm.slane %v186_v62, 0 }
  0x89   :  { %v115_v15 = vadd.f32 %v422_v9, %v110_v63 }
  0x8a   :  { %v219_v24 = vpop.permute.xlu2 %218 }
  0x8e   :  { %v85_v32 = vpop.permute.xlu0 %84 }
  0x8f   :  { %v136_v37 = vpop.permute.xlu1 %135  ;;  %v87_v61 = vadd.f32 %v85_v32, %v81_v51 }
  0x90   :  { %v138_v6 = vmul.f32 %v136_v37, %v132_v57 }
  0x91   :  { %v91_v12 = vsel %vm545_vm2, %v87_v61, 0.0 }
  0x92   :  { %v119_v20 = vsel %vm118_vm3, %v115_v15, %v91_v12 }
  0x97   :  { %v141_v3 = vpop.permute.xlu0 %140 }
  0x98   :  { %v192_v5 = vpop.permute.xlu1 %191  ;;  %v143_v13 = vadd.f32 %v141_v3, %v138_v6 }
  0x99   :  { %v194_v2 = vmul.f32 %v192_v5, %v188_v10 }
  0x9a   :  { %v147_v21 = vsel %vm554_vm4, %v143_v13, %v119_v20 }
  0x9b   :  { %v175_v25 = vsel %vm174_vm5, %v171_v22, %v147_v21 }
  0xa0   :  { %v197_v23 = vpop.permute.xlu1 %196 }
  0xa1   :  { %v199_v9 = vadd.f32 %v197_v23, %v194_v2 }
  0xa3   :  { %v203_v26 = vsel %vm202_vm6, %v199_v9, %v175_v25 }
  0xa4   :  { %v221_v27 = vsel %vm215_vm7, %v219_v24, %v203_v26 }
  0xa5   :  { %222 = vst [vmem:[#allocation9] sm:$0xf] %v221_v27 }
  0xa6   :  { %233 = dma.vmem_to_hbm [thread:$0]  %s229_s19, 64, %s231_s22, [#allocation4]  }
  0xa7   :  { %364 = dma.done.wait [#allocation4], 64  }
  0xa8   :  { %365 = vsyncadd [#allocation4], 4294967232 }
  0xa9   :  { %238 = vsyncpa [#allocation3], 1 }
  0xaa   :  { %239 = vsyncpa [#allocation8], 1 }
  0xab   :  { %240 = vsyncpa [#allocation4], 1 }
  0xac   :  { %241 = vsyncpa [#allocation5], 1 }

</bundles_post_ra>
